<compile_context>
chip_gen: v5e
topology: v5e:2x2
jax: 0.10.0
libtpu: 0.0.40
codegen_flags: <defaults>
</compile_context>

<pallas_src>
import jax
import jax.numpy as jnp
from jax.experimental import pallas as pl
from jax.experimental.pallas import tpu as pltpu


def _normalize_kernel(scale_ref, bias_ref, x_ref, o_ref):
    """scale/bias: (C,) f32 in SMEM; x_ref/o_ref: (C, TILE_R, 128) blocks."""
    num_channels = o_ref.shape[0]
    for c in range(num_channels):            # static unroll (C == 3)
        x = x_ref[c].astype(jnp.float32)     # (TILE_R, 128) lane/sublane dense
        y = x * scale_ref[c] + bias_ref[c]   # fused (x/255 - mean) / std
        o_ref[c] = y.astype(o_ref.dtype)


def _round_up(x, m):
    return ((x + m - 1) // m) * m


def _choose_tile(M, tile_rows):
    """Pick (tile_rows, num_tiles) for the spatial-row axis of length M.

    Rules (perf review):
      * tiles are multiples of 32 rows (covers u8 (32,128) and f32 (8,128)
        tilings) unless a single full-extent block is used;
      * split into >= 2 grid points once there is enough work so both v7x
        TensorCores get a share, but keep >= ~256 rows per step so per-step
        overhead stays amortized;
      * derive the tile from the tile count so the ragged tail is small.
    """
    MIN_TR = 256
    cap = max(32, (min(int(tile_rows), 2048) // 32) * 32)
    if M <= 32:
        return M, 1                          # tiny image: one full-extent block
    half = _round_up(pl.cdiv(M, 2), 32)      # 2-way split target (v7x megacore)
    target = min(cap, half)                  # respect caller cap
    target = max(target, min(MIN_TR, cap))   # don't go below MIN_TR unless forced
    if target >= M:
        return M, 1                          # whole spatial extent, one block
    nt = pl.cdiv(M, target)
    tr = _round_up(pl.cdiv(M, nt), 32)       # balanced tiles, small ragged tail
    nt = pl.cdiv(M, tr)
    return tr, nt


def numpy_normalize(img_hwc, mean, std, *, tile_rows=1024,
                    out_dtype=jnp.float32):
    """img_hwc: (H, W, C) uint8 (or float) array; mean/std: length-C.

    Returns (C, H, W) in `out_dtype` (default float32), matching
    NumpyNormalize.forward semantics (numpy would promote to float64;
    float32 on TPU; bf16 optional for bf16 consumers).
    """
    img = jnp.asarray(img_hwc)
    if img.ndim != 3:
        raise ValueError("expected an (H, W, C) image")
    H, W, C = img.shape
    N = H * W
    L = 128

    mean_arr = jnp.asarray(mean, jnp.float32).reshape(C)
    std_arr = jnp.asarray(std, jnp.float32).reshape(C)
    scale = 1.0 / (255.0 * std_arr)          # fused   x * (1/(255*std))
    bias = -(mean_arr / std_arr)             # fused   - mean/std

    # Single uint8 relayout; allow_input_fusion below lets XLA fold it into
    # the Pallas input instead of materializing the CHW image in HBM.
    x = jnp.transpose(img, (2, 0, 1)).reshape(C, N)

    # Lane-dense spatial view: pad H*W up to a multiple of 128 if needed so
    # every tile is an unmasked (.., 128) store and VMEM stays bounded.
    n_pad = _round_up(N, L)
    if n_pad != N:
        x = jnp.pad(x, ((0, 0), (0, n_pad - N)))
    M = n_pad // L
    x = x.reshape(C, M, L)                   # free, contiguous reshape

    tr, nt = _choose_tile(M, tile_rows)

    grid_spec = pltpu.PrefetchScalarGridSpec(
        num_scalar_prefetch=2,               # scale, bias -> SMEM
        grid=(nt,),
        in_specs=[
            pl.BlockSpec((C, tr, L), lambda t, scale_ref, bias_ref: (0, t, 0)),
        ],
        out_specs=pl.BlockSpec(
            (C, tr, L), lambda t, scale_ref, bias_ref: (0, t, 0)),
    )

    out = pl.pallas_call(
        _normalize_kernel,
        out_shape=jax.ShapeDtypeStruct((C, M, L), out_dtype),
        grid_spec=grid_spec,
        compiler_params=pltpu.CompilerParams(
            dimension_semantics=("parallel",),
            # scale/bias: never fuse; image: allow XLA to fuse the uint8
            # HWC->CHW transpose (+pad) into the Pallas input.
            allow_input_fusion=[False, False, True],
        ),
    )(scale, bias, x)

    out = out.reshape(C, n_pad)
    if n_pad != N:
        out = out[:, :N]
    return out.reshape(C, H, W)


def _reference(img_hwc, mean, std):
    ref = jnp.transpose(jnp.asarray(img_hwc).astype(jnp.float32),
                        (2, 0, 1)) / 255.0
    ref = ref - jnp.asarray(mean, jnp.float32).reshape(-1, 1, 1)
    ref = ref / jnp.asarray(std, jnp.float32).reshape(-1, 1, 1)
    return ref


if __name__ == "__main__":
    key = jax.random.PRNGKey(0)
    # CLIP/ImageNet-style constants.
    mean = (0.48145466, 0.4578275, 0.40821073)
    std = (0.26862954, 0.26130258, 0.27577711)

    # (shape, tile_rows, out_dtype):
    #   tiny aligned image (single block);
    #   multi-tile ragged spatial grid (M=72, tr=64 -> 2 grid steps);
    #   odd-sized image (H*W % 128 != 0 -> padded lane-dense path);
    #   bf16 output option.
    cases = [
        ((16, 16, 3), 1024, jnp.float32),
        ((96, 96, 3), 64, jnp.float32),
        ((17, 19, 3), 1024, jnp.float32),
        ((16, 16, 3), 1024, jnp.bfloat16),
    ]

    for idx, ((H, W, C), tr, odt) in enumerate(cases):
        k = jax.random.fold_in(key, idx)
        img = jax.random.randint(k, (H, W, C), 0, 256,
                                 dtype=jnp.int32).astype(jnp.uint8)
        out = numpy_normalize(img, mean, std, tile_rows=tr, out_dtype=odt)
        out = jax.block_until_ready(out)

        ref = _reference(img, mean, std)
        assert out.shape == (C, H, W), f"case {idx}: shape {out.shape}"
        assert out.dtype == odt, f"case {idx}: dtype {out.dtype}"
        tol = 2e-2 if odt == jnp.bfloat16 else 1e-5
        assert jnp.allclose(out.astype(jnp.float32), ref,
                            atol=tol, rtol=tol), f"case {idx}"

    print("KERNEL_OK")
</pallas_src>

<mosaic_0001>
module attributes {stable_mosaic.version = 11 : i64} {
  func.func @_normalize_kernel(%arg0: i32, %arg1: memref<3xf32, #tpu.memory_space<smem>>, %arg2: memref<3xf32, #tpu.memory_space<smem>>, %arg3: memref<3x2x128xi8, #tpu.memory_space<vmem>>, %arg4: memref<3x2x128xf32, #tpu.memory_space<vmem>>) attributes {dimension_semantics = [#tpu.dimension_semantics<parallel>], iteration_bounds = array<i64: 1>, scalar_prefetch = 2 : i64, scratch_operands = 0 : i64, tpu.core_type = #tpu.core_type<tc>, window_params = [{transform_indices = @transform_0, window_bounds = array<i64: 3, 2, 128>}, {transform_indices = @transform_1, window_bounds = array<i64: 3, 2, 128>}]} {
    %c0 = arith.constant 0 : index
    %c0_0 = arith.constant 0 : index
    %c0_1 = arith.constant 0 : index
    %0 = vector.load %arg3[%c0, %c0_0, %c0_1] : memref<3x2x128xi8, #tpu.memory_space<vmem>>, vector<1x2x128xi8>
    %1 = vector.shape_cast %0 : vector<1x2x128xi8> to vector<2x128xi8>
    %2 = arith.uitofp %1 : vector<2x128xi8> to vector<2x128xf32>
    %c0_2 = arith.constant 0 : index
    %3 = memref.load %arg1[%c0_2] : memref<3xf32, #tpu.memory_space<smem>>
    %4 = vector.broadcast %3 : f32 to vector<2x128xf32>
    %5 = arith.mulf %2, %4 : vector<2x128xf32>
    %c0_3 = arith.constant 0 : index
    %6 = memref.load %arg2[%c0_3] : memref<3xf32, #tpu.memory_space<smem>>
    %7 = vector.broadcast %6 : f32 to vector<2x128xf32>
    %8 = arith.addf %5, %7 : vector<2x128xf32>
    %c0_4 = arith.constant 0 : index
    %c0_5 = arith.constant 0 : index
    %c0_6 = arith.constant 0 : index
    %9 = vector.load %arg4[%c0_4, %c0_5, %c0_6] : memref<3x2x128xf32, #tpu.memory_space<vmem>>, vector<1x2x128xf32>
    %10 = vector.shape_cast %9 : vector<1x2x128xf32> to vector<2x128xf32>
    %11 = vector.shape_cast %8 : vector<2x128xf32> to vector<1x2x128xf32>
    tpu.vector_store %arg4[%c0_4, %c0_5, %c0_6], %11 {strides = array<i32>} : memref<3x2x128xf32, #tpu.memory_space<vmem>>, vector<1x2x128xf32>,
    %c1 = arith.constant 1 : index
    %c0_7 = arith.constant 0 : index
    %c0_8 = arith.constant 0 : index
    %12 = vector.load %arg3[%c1, %c0_7, %c0_8] : memref<3x2x128xi8, #tpu.memory_space<vmem>>, vector<1x2x128xi8>
    %13 = vector.shape_cast %12 : vector<1x2x128xi8> to vector<2x128xi8>
    %14 = arith.uitofp %13 : vector<2x128xi8> to vector<2x128xf32>
    %c1_9 = arith.constant 1 : index
    %15 = memref.load %arg1[%c1_9] : memref<3xf32, #tpu.memory_space<smem>>
    %16 = vector.broadcast %15 : f32 to vector<2x128xf32>
    %17 = arith.mulf %14, %16 : vector<2x128xf32>
    %c1_10 = arith.constant 1 : index
    %18 = memref.load %arg2[%c1_10] : memref<3xf32, #tpu.memory_space<smem>>
    %19 = vector.broadcast %18 : f32 to vector<2x128xf32>
    %20 = arith.addf %17, %19 : vector<2x128xf32>
    %c1_11 = arith.constant 1 : index
    %c0_12 = arith.constant 0 : index
    %c0_13 = arith.constant 0 : index
    %21 = vector.load %arg4[%c1_11, %c0_12, %c0_13] : memref<3x2x128xf32, #tpu.memory_space<vmem>>, vector<1x2x128xf32>
    %22 = vector.shape_cast %21 : vector<1x2x128xf32> to vector<2x128xf32>
    %23 = vector.shape_cast %20 : vector<2x128xf32> to vector<1x2x128xf32>
    tpu.vector_store %arg4[%c1_11, %c0_12, %c0_13], %23 {strides = array<i32>} : memref<3x2x128xf32, #tpu.memory_space<vmem>>, vector<1x2x128xf32>,
    %c2 = arith.constant 2 : index
    %c0_14 = arith.constant 0 : index
    %c0_15 = arith.constant 0 : index
    %24 = vector.load %arg3[%c2, %c0_14, %c0_15] : memref<3x2x128xi8, #tpu.memory_space<vmem>>, vector<1x2x128xi8>
    %25 = vector.shape_cast %24 : vector<1x2x128xi8> to vector<2x128xi8>
    %26 = arith.uitofp %25 : vector<2x128xi8> to vector<2x128xf32>
    %c2_16 = arith.constant 2 : index
    %27 = memref.load %arg1[%c2_16] : memref<3xf32, #tpu.memory_space<smem>>
    %28 = vector.broadcast %27 : f32 to vector<2x128xf32>
    %29 = arith.mulf %26, %28 : vector<2x128xf32>
    %c2_17 = arith.constant 2 : index
    %30 = memref.load %arg2[%c2_17] : memref<3xf32, #tpu.memory_space<smem>>
    %31 = vector.broadcast %30 : f32 to vector<2x128xf32>
    %32 = arith.addf %29, %31 : vector<2x128xf32>
    %c2_18 = arith.constant 2 : index
    %c0_19 = arith.constant 0 : index
    %c0_20 = arith.constant 0 : index
    %33 = vector.load %arg4[%c2_18, %c0_19, %c0_20] : memref<3x2x128xf32, #tpu.memory_space<vmem>>, vector<1x2x128xf32>
    %34 = vector.shape_cast %33 : vector<1x2x128xf32> to vector<2x128xf32>
    %35 = vector.shape_cast %32 : vector<2x128xf32> to vector<1x2x128xf32>
    tpu.vector_store %arg4[%c2_18, %c0_19, %c0_20], %35 {strides = array<i32>} : memref<3x2x128xf32, #tpu.memory_space<vmem>>, vector<1x2x128xf32>,
    return
  }
  func.func @transform_0(%arg0: i32, %arg1: memref<3xf32, #tpu.memory_space<smem>>, %arg2: memref<3xf32, #tpu.memory_space<smem>>) -> (i32, i32, i32) {
    %c0_i32 = arith.constant 0 : i32
    %c0_i32_0 = arith.constant 0 : i32
    %c0_i32_1 = arith.constant 0 : i32
    return %c0_i32, %arg0, %c0_i32_0 : i32, i32, i32
  }
  func.func @transform_1(%arg0: i32, %arg1: memref<3xf32, #tpu.memory_space<smem>>, %arg2: memref<3xf32, #tpu.memory_space<smem>>) -> (i32, i32, i32) {
    %c0_i32 = arith.constant 0 : i32
    %c0_i32_0 = arith.constant 0 : i32
    %c0_i32_1 = arith.constant 0 : i32
    return %c0_i32, %arg0, %c0_i32_0 : i32, i32, i32
  }
}

</mosaic_0001>

<bundles_post_ra>
// kernel: tpu_custom_call.1
= control target key start
LH: loop header
LB: loop body
LE: loop exit
PB: predicated region body
PF: predicated region fallthrough
CT: control target
= control target key end

     0   :  { %s142_s18 = smov [#allocation3]   ;;  %s143_s19 = smov [#allocation4]   ;;  %s185_s0 = inlined_call_operand.vmem [shape: f32[3], index: 0, kind: input, shape index: {}]   ;;  %s186_s2 = inlined_call_operand.vmem [shape: u8[3,2,128], index: 2, kind: input, shape index: {}]   ;;  %s187_s3 = inlined_call_operand.hbm [shape: f32[3,2,128], index: 3, kind: output, shape index: {}]   ;;  %s188_s1 = inlined_call_operand.vmem [shape: f32[3], index: 1, kind: input, shape index: {}]  }
   0x1   :  { %s9_s14 = sshll.u32 %s185_s0, 4  ;;  %s14_s17 = sshll.u32 %s188_s1, 4  ;;  %s10_s14 = int_to_ptr.vmem [resolvable:$true] %s9_s14  ;;  %s15_s17 = int_to_ptr.vmem [resolvable:$true] %s14_s17 }
   0x2   :  { %12 = dma.vmem_to_smem %s10_s14, 16, %s142_s18, [#allocation2] }
   0x3   :  { %17 = dma.vmem_to_smem %s15_s17, 16, %s143_s19, [#allocation2] }
   0x4   :  { %138 = dma.done.wait [#allocation2], 32 }
   0x5   :  { %139 = vsyncadd [#allocation2], 4294967264 }
   0x6   :  { %20 = sfence }
   0x7   :  { %v24_v0 = vld [vmem:[%s186_s2] sm:$0x1]  ;;  %s28_s22 = sld [smem:[#allocation3]]  ;;  %v79_v1 = vld [vmem:[%s186_s2 + $0x1] sm:$0x1] }
   0x8   :  { %v25_v2 = vunpack.c.0.s8 %v24_v0  ;;  %s31_s1 = sld [smem:[#allocation4]]  ;;  %v37_v3 = vunpack.c.0.s8 %v79_v1  ;;  %v82_v4 = vld [vmem:[%s186_s2 + $0x2] sm:$0x1] }
   0x9   :  { %21 = vsyncpa [#allocation6], 0  ;;  %s80_s26 = sld [smem:[#allocation3 + $0x1]]  ;;  %v50_v5 = vunpack.c.0.s8 %v82_v4  ;;  %s144_s2 = smov [#allocation5]  }
   0xa   :  { %v26_v6 = vand.u32 255, %v25_v2  ;;  %v38_v7 = vand.u32 255, %v37_v3  ;;  %s81_s27 = sld [smem:[#allocation4 + $0x1]]  ;;  %s65_s30 = sshll.u32 %s144_s2, 4  ;;  %s66_s30 = int_to_ptr.vmem [resolvable:$true] %s65_s30 }
   0xb   :  { %v51_v8 = vand.u32 255, %v50_v5  ;;  %s83_s28 = sld [smem:[#allocation3 + $0x2]]  ;;  %s67_s6 = sshll.u32 %s187_s3, 4  ;;  %s68_s6 = int_to_ptr.hbm [resolvable:$true] %s67_s6 }
   0xc   :  { %v27_v9 = vcvt.s32.f32 %v26_v6  ;;  %v39_v10 = vcvt.s32.f32 %v38_v7  ;;  %s84_s29 = sld [smem:[#allocation4 + $0x2]]  ;;  %s145_s7 = smov 32  }
   0xd   :  { %v29_v11 = vstv %s28_s22  ;;  %v52_v14 = vcvt.s32.f32 %v51_v8  ;;  %s146_s8 = smov 2  }
   0xe   :  { %v30_v12 = vmul.f32 %v29_v11, %v27_v9  ;;  %v32_v13 = vstv %s31_s1 }
   0xf   :  { %v41_v15 = vstv %s80_s26 }
  0x10   :  { %v33_v16 = vadd.f32 %v32_v13, %v30_v12  ;;  %v42_v17 = vmul.f32 %v41_v15, %v39_v10  ;;  %v44_v18 = vstv %s81_s27 }
  0x11   :  { %v54_v19 = vstv %s83_s28 }
  0x12   :  { %34 = vst [vmem:[#allocation5] sm:$0x3] %v33_v16  ;;  %v45_v20 = vadd.f32 %v44_v18, %v42_v17  ;;  %v55_v21 = vmul.f32 %v54_v19, %v52_v14  ;;  %v57_v22 = vstv %s84_s29 }
  0x14   :  { %47 = vst [vmem:[#allocation5 + $0x2] sm:$0x3] %v45_v20  ;;  %v58_v23 = vadd.f32 %v57_v22, %v55_v21 }
  0x16   :  { %60 = vst [vmem:[#allocation5 + $0x4] sm:$0x3] %v58_v23 }
  0x17   :  { %73 = dma.vmem_to_hbm [thread:$0]  %s66_s30, 96, %s68_s6, [#allocation6], %s145_s7, %s145_s7, %s146_s8  }
  0x18   :  { %140 = dma.done.wait [#allocation6], 96  }
  0x19   :  { %141 = vsyncadd [#allocation6], 4294967200 }
  0x1a   :  { %78 = vsyncpa [#allocation6], 1 }

</bundles_post_ra>
